<compile_context>
chip_gen: v5e
topology: v5e:2x2
jax: 0.10.0
libtpu: 0.0.40
codegen_flags: <defaults>
</compile_context>

<pallas_src>
import jax
import jax.numpy as jnp
from jax.experimental import pallas as pl
from jax.experimental.pallas import tpu as pltpu


# ~2 MiB of f32 per tile per operand; 4 operands x 2 buffers = 16 MiB VMEM.
_TARGET_BLOCK_ELEMS = 512 * 1024
# Rare fallback (total not a multiple of 128): (1, 32768) blocks -> 1 MiB VMEM
# footprint per buffer after sublane padding, 8 MiB total.  Safe everywhere.
_FALLBACK_BLOCK_LANE = 32 * 1024
_VMEM_LIMIT_BYTES = 48 << 20


def _decomp_kernel(scal_ref, d_ref, t_ref, z_ref, o_ref):
    # scal_ref (SMEM, shape (3,)): [1/(1+mu), mu, max(gama, 0)]
    inv_1p_mu = scal_ref[0]
    mu = scal_ref[1]
    param = scal_ref[2]
    d = d_ref[...]
    # LowrankModule: B = (D - T + mu*Z) / (1 + mu)
    b = (d - t_ref[...] + mu * z_ref[...]) * inv_1p_mu
    # SparseModule: with param = max(gama, 0) >= 0,
    #   max(0, max(0, x-param) + min(0, x+param)) == max(0, x - param).
    o_ref[...] = jnp.maximum(d - b - param, jnp.zeros((), d.dtype))


def _plan_tiling(total):
    """Pick a zero-copy 2-D view (rows, cols), block shape and grid."""
    for lane in (1024, 512, 256, 128):
        if total % lane == 0:
            rows, cols = total // lane, lane
            cap = max(8, (_TARGET_BLOCK_ELEMS // lane) // 8 * 8)  # multiple of 8
            if rows <= cap:
                block_rows = rows          # full row extent: legal for any size
            else:
                block_rows = cap           # multiple of 8; ragged tail is masked
            return (rows, cols), (block_rows, cols), (pl.cdiv(rows, block_rows), 1)
    # total not a multiple of 128: single lane-major row, 128-multiple blocks,
    # ragged final block masked by Pallas (still no pad copy / output crop).
    rows, cols = 1, total
    block_cols = cols if cols <= _FALLBACK_BLOCK_LANE else _FALLBACK_BLOCK_LANE
    return (rows, cols), (1, block_cols), (1, pl.cdiv(cols, block_cols))


def decomposition_forward(D, T, Z, mu, lamd, gama):
    """Fused DecompositionModule.forward. Returns (D, T_new).

    D, T, Z: (N, C, H, W) float32.  mu, gama: scalars.  lamd only feeds the
    ZnetModule, whose output is discarded by this module's forward.
    """
    del lamd  # consumed only by the output-irrelevant ZnetModule
    dtype = D.dtype
    total = D.size

    view_shape, block_shape, grid = _plan_tiling(total)

    # Free (no-copy) flattening views; no jnp.pad, no crop.
    d2 = D.reshape(view_shape)
    t2 = T.reshape(view_shape)
    z2 = Z.reshape(view_shape)

    # Scalar prep hoisted out of the per-tile body (done once here).
    mu_s = jnp.asarray(mu, dtype).reshape(())
    param = jnp.maximum(jnp.asarray(gama, dtype).reshape(()), jnp.zeros((), dtype))
    inv_1p_mu = jnp.asarray(1.0, dtype) / (jnp.asarray(1.0, dtype) + mu_s)
    scal = jnp.stack([inv_1p_mu, mu_s, param]).astype(dtype)

    blk = pl.BlockSpec(block_shape, lambda i, j: (i, j))

    t_new2 = pl.pallas_call(
        _decomp_kernel,
        out_shape=jax.ShapeDtypeStruct(view_shape, dtype),
        grid=grid,
        in_specs=[
            pl.BlockSpec(memory_space=pltpu.MemorySpace.SMEM),  # hoisted scalars
            blk,                                                # D tile
            blk,                                                # T tile
            blk,                                                # Z tile
        ],
        out_specs=blk,
        compiler_params=pltpu.CompilerParams(
            dimension_semantics=("parallel", "parallel"),
            vmem_limit_bytes=_VMEM_LIMIT_BYTES,
        ),
        cost_estimate=pl.CostEstimate(
            flops=6 * total, transcendentals=0, bytes_accessed=16 * total),
    )(scal, d2, t2, z2)

    return D, t_new2.reshape(D.shape)


def _reference(D, T, Z, mu, gama):
    # Straight port of the PyTorch module (no algebraic simplification).
    B = (D - T + mu * Z) / (1.0 + mu)
    x = D - B
    param = jnp.maximum(jnp.asarray(gama, D.dtype), 0.0)
    t = jnp.maximum(x - param, 0.0) + jnp.minimum(x + param, 0.0)
    return D, jnp.maximum(t, 0.0)


if __name__ == "__main__":
    key = jax.random.PRNGKey(0)
    kD, kT, kZ, kL = jax.random.split(key, 4)

    N, C, H, W = 2, 4, 16, 16
    D = jax.random.normal(kD, (N, C, H, W), dtype=jnp.float32)
    T = jax.random.normal(kT, (N, C, H, W), dtype=jnp.float32)
    Z = jax.random.normal(kZ, (N, C, H, W), dtype=jnp.float32)
    lamd = jax.random.normal(kL, (N, 1, H, W), dtype=jnp.float32)
    mu = jnp.float32(0.5)
    gama = jnp.float32(0.1)

    D_out, T_out = decomposition_forward(D, T, Z, mu, lamd, gama)
    T_out = jax.block_until_ready(T_out)

    D_ref, T_ref = _reference(D, T, Z, mu, gama)
    assert D_out.shape == (N, C, H, W) and T_out.shape == (N, C, H, W)
    assert jnp.allclose(D_out, D_ref), "D passthrough mismatch"
    assert jnp.allclose(T_out, T_ref, atol=1e-6, rtol=1e-6), "T mismatch vs. reference"

    print("KERNEL_OK")
</pallas_src>

<mosaic_0001>
module attributes {stable_mosaic.version = 11 : i64} {
  func.func @_decomp_kernel(%arg0: i32, %arg1: i32, %arg2: memref<3xf32, #tpu.memory_space<smem>>, %arg3: memref<2x1024xf32, #tpu.memory_space<vmem>>, %arg4: memref<2x1024xf32, #tpu.memory_space<vmem>>, %arg5: memref<2x1024xf32, #tpu.memory_space<vmem>>, %arg6: memref<2x1024xf32, #tpu.memory_space<vmem>>) attributes {dimension_semantics = [#tpu.dimension_semantics<parallel>, #tpu.dimension_semantics<parallel>], iteration_bounds = array<i64: 1, 1>, scalar_prefetch = 0 : i64, scratch_operands = 0 : i64, tpu.core_type = #tpu.core_type<tc>, window_params = [{transform_indices = @transform_0, window_bounds = array<i64: 3>}, {transform_indices = @transform_1, window_bounds = array<i64: 2, 1024>}, {transform_indices = @transform_2, window_bounds = array<i64: 2, 1024>}, {transform_indices = @transform_3, window_bounds = array<i64: 2, 1024>}, {transform_indices = @transform_4, window_bounds = array<i64: 2, 1024>}]} {
    %c0 = arith.constant 0 : index
    %0 = memref.load %arg2[%c0] : memref<3xf32, #tpu.memory_space<smem>>
    %c1 = arith.constant 1 : index
    %1 = memref.load %arg2[%c1] : memref<3xf32, #tpu.memory_space<smem>>
    %c2 = arith.constant 2 : index
    %2 = memref.load %arg2[%c2] : memref<3xf32, #tpu.memory_space<smem>>
    %c0_0 = arith.constant 0 : index
    %c0_1 = arith.constant 0 : index
    %3 = vector.load %arg3[%c0_0, %c0_1] : memref<2x1024xf32, #tpu.memory_space<vmem>>, vector<2x1024xf32>
    %c0_2 = arith.constant 0 : index
    %c0_3 = arith.constant 0 : index
    %4 = vector.load %arg4[%c0_2, %c0_3] : memref<2x1024xf32, #tpu.memory_space<vmem>>, vector<2x1024xf32>
    %5 = arith.subf %3, %4 : vector<2x1024xf32>
    %c0_4 = arith.constant 0 : index
    %c0_5 = arith.constant 0 : index
    %6 = vector.load %arg5[%c0_4, %c0_5] : memref<2x1024xf32, #tpu.memory_space<vmem>>, vector<2x1024xf32>
    %7 = vector.broadcast %1 : f32 to vector<2x1024xf32>
    %8 = arith.mulf %7, %6 : vector<2x1024xf32>
    %9 = arith.addf %5, %8 : vector<2x1024xf32>
    %10 = vector.broadcast %0 : f32 to vector<2x1024xf32>
    %11 = arith.mulf %9, %10 : vector<2x1024xf32>
    %12 = arith.subf %3, %11 : vector<2x1024xf32>
    %13 = vector.broadcast %2 : f32 to vector<2x1024xf32>
    %14 = arith.subf %12, %13 : vector<2x1024xf32>
    %cst = arith.constant 0.000000e+00 : f32
    %15 = vector.broadcast %cst : f32 to vector<2x1024xf32>
    %16 = arith.maximumf %14, %15 : vector<2x1024xf32>
    %c0_6 = arith.constant 0 : index
    %c0_7 = arith.constant 0 : index
    %17 = vector.load %arg6[%c0_6, %c0_7] : memref<2x1024xf32, #tpu.memory_space<vmem>>, vector<2x1024xf32>
    tpu.vector_store %arg6[%c0_6, %c0_7], %16 {strides = array<i32>} : memref<2x1024xf32, #tpu.memory_space<vmem>>, vector<2x1024xf32>,
    return
  }
  func.func @transform_0(%arg0: i32, %arg1: i32) -> i32 {
    %c0_i32 = arith.constant 0 : i32
    %c0_i32_0 = arith.constant 0 : i32
    return %c0_i32 : i32
  }
  func.func @transform_1(%arg0: i32, %arg1: i32) -> (i32, i32) {
    %c0_i32 = arith.constant 0 : i32
    return %arg0, %arg1 : i32, i32
  }
  func.func @transform_2(%arg0: i32, %arg1: i32) -> (i32, i32) {
    %c0_i32 = arith.constant 0 : i32
    return %arg0, %arg1 : i32, i32
  }
  func.func @transform_3(%arg0: i32, %arg1: i32) -> (i32, i32) {
    %c0_i32 = arith.constant 0 : i32
    return %arg0, %arg1 : i32, i32
  }
  func.func @transform_4(%arg0: i32, %arg1: i32) -> (i32, i32) {
    %c0_i32 = arith.constant 0 : i32
    return %arg0, %arg1 : i32, i32
  }
}

</mosaic_0001>

<bundles_post_ra>
// kernel: tpu_custom_call.1
= control target key start
LH: loop header
LB: loop body
LE: loop exit
PB: predicated region body
PF: predicated region fallthrough
CT: control target
= control target key end

     0   :  { %9 = vsyncpa [#allocation5], 0  ;;  %s287_s0 = inlined_call_operand.hbm [shape: f32[3], index: 0, kind: input, shape index: {}]   ;;  %s288_s1 = inlined_call_operand.hbm [shape: f32[2,1024], index: 1, kind: input, shape index: {}]   ;;  %s289_s2 = inlined_call_operand.hbm [shape: f32[2,1024], index: 2, kind: input, shape index: {}]   ;;  %s290_s3 = inlined_call_operand.hbm [shape: f32[2,1024], index: 3, kind: input, shape index: {}]   ;;  %s291_s4 = inlined_call_operand.hbm [shape: f32[2,1024], index: 4, kind: output, shape index: {}]  }
   0x1   :  { %10 = vsyncpa [#allocation3], 0 }
   0x2   :  { %11 = vsyncpa [#allocation8], 0  ;;  %s38_s17 = sshll.u32 %s289_s2, 4  ;;  %s39_s17 = int_to_ptr.hbm [resolvable:$true] %s38_s17 }
   0x3   :  { %12 = vsyncpa [#allocation4], 0  ;;  %s242_s18 = smov [#allocation7]   ;;  %s18_s22 = sshll.u32 %s287_s0, 4  ;;  %s19_s22 = int_to_ptr.hbm [resolvable:$true] %s18_s22 }
   0x4   :  { %s40_s19 = sshll.u32 %s242_s18, 4  ;;  %s243_s23 = smov [#allocation2]   ;;  %s41_s19 = int_to_ptr.vmem [resolvable:$true] %s40_s19 }
   0x5   :  { %43 = dma.hbm_to_vmem [thread:$0]  %s39_s17, 256, %s41_s19, [#allocation8]  }
   0x6   :  { %21 = dma.hbm_to_smem %s19_s22, 16, %s243_s23, [#allocation5]  }
   0x7   :  { %s27_s26 = sshll.u32 %s288_s1, 4  ;;  %s244_s27 = smov [#allocation6]   ;;  %s28_s26 = int_to_ptr.hbm [resolvable:$true] %s27_s26 }
   0x8   :  { %s29_s2 = sshll.u32 %s244_s27, 4  ;;  %s49_s30 = sshll.u32 %s290_s3, 4  ;;  %s30_s2 = int_to_ptr.vmem [resolvable:$true] %s29_s2  ;;  %s50_s30 = int_to_ptr.hbm [resolvable:$true] %s49_s30 }
   0x9   :  { %32 = dma.hbm_to_vmem [thread:$0]  %s28_s26, 256, %s30_s2, [#allocation3]  }
   0xa   :  { %s245_s5 = smov [#allocation9]  }
   0xb   :  { %s51_s0 = sshll.u32 %s245_s5, 4  ;;  %s52_s0 = int_to_ptr.vmem [resolvable:$true] %s51_s0 }
   0xc   :  { %54 = dma.hbm_to_vmem [thread:$0]  %s50_s30, 256, %s52_s0, [#allocation8]  }
   0xd   :  { %234 = dma.done.wait [#allocation5], 16  }
   0xe   :  { %235 = vsyncadd [#allocation5], 4294967280 }
   0xf   :  { %236 = dma.done.wait [#allocation3], 256  }
  0x10   :  { %237 = vsyncadd [#allocation3], 4294967040 }
  0x11   :  { %238 = dma.done.wait [#allocation8], 512  }
  0x12   :  { %239 = vsyncadd [#allocation8], 4294966784 }
  0x13   :  { %71 = sfence }
  0x14   :  { %s72_s1 = sld [smem:[#allocation2]]  ;;  %v75_v0 = vld [vmem:[#allocation6] sm:$0xff]  ;;  %v77_v1 = vld [vmem:[#allocation7] sm:$0xff]  ;;  %v76_v2 = vld [vmem:[#allocation6 + $0x8] sm:$0xff]  ;;  %s246_s7 = smov [#allocation10]  }
  0x15   :  { %s119_s6 = sld [smem:[#allocation2 + $0x1]]  ;;  %v78_v3 = vld [vmem:[#allocation7 + $0x8] sm:$0xff]  ;;  %v81_v4 = vld [vmem:[#allocation9] sm:$0xff]  ;;  %v82_v5 = vld [vmem:[#allocation9 + $0x8] sm:$0xff]  ;;  %v79_v6 = vsub.f32 %v75_v0, %v77_v1  ;;  %s105_s8 = sshll.u32 %s246_s7, 4  ;;  %s106_s8 = int_to_ptr.vmem [resolvable:$true] %s105_s8 }
  0x16   :  { %s120_s3 = sld [smem:[#allocation2 + $0x2]]  ;;  %v80_v7 = vsub.f32 %v76_v2, %v78_v3  ;;  %s107_s11 = sshll.u32 %s291_s4, 4  ;;  %s108_s11 = int_to_ptr.hbm [resolvable:$true] %s107_s11 }
  0x1a   :  { %v88_v11 = vstv %s72_s1 }
  0x1b   :  { %v83_v8 = vstv %s119_s6 }
  0x1c   :  { %v84_v9 = vmul.f32 %v83_v8, %v81_v4  ;;  %v85_v10 = vmul.f32 %v83_v8, %v82_v5  ;;  %v93_v16 = vstv %s120_s3 }
  0x1e   :  { %v86_v12 = vadd.f32 %v84_v9, %v79_v6  ;;  %v87_v13 = vadd.f32 %v85_v10, %v80_v7 }
  0x20   :  { %v89_v14 = vmul.f32 %v88_v11, %v86_v12  ;;  %v90_v15 = vmul.f32 %v88_v11, %v87_v13 }
  0x22   :  { %v91_v17 = vsub.f32 %v75_v0, %v89_v14  ;;  %v92_v18 = vsub.f32 %v76_v2, %v90_v15 }
  0x24   :  { %v94_v19 = vsub.f32 %v91_v17, %v93_v16  ;;  %v95_v20 = vsub.f32 %v92_v18, %v93_v16 }
  0x26   :  { %v96_v21 = vmax.f32 %v94_v19, 0.0  ;;  %v97_v22 = vmax.f32 %v95_v20, 0.0 }
  0x28   :  { %98 = vst [vmem:[#allocation10] sm:$0xff] %v96_v21 }
  0x29   :  { %99 = vst [vmem:[#allocation10 + $0x8] sm:$0xff] %v97_v22 }
  0x2a   :  { %110 = dma.vmem_to_hbm [thread:$0]  %s106_s8, 256, %s108_s11, [#allocation4]  }
  0x2b   :  { %240 = dma.done.wait [#allocation4], 256  }
  0x2c   :  { %241 = vsyncadd [#allocation4], 4294967040 }
  0x2d   :  { %115 = vsyncpa [#allocation3], 1 }
  0x2e   :  { %116 = vsyncpa [#allocation8], 1 }
  0x2f   :  { %117 = vsyncpa [#allocation4], 1 }
  0x30   :  { %118 = vsyncpa [#allocation5], 1 }

</bundles_post_ra>
